<compile_context>
chip_gen: v6e
topology: v6e:2x2x1
jax: 0.10.0
libtpu: 0.0.40
codegen_flags: <defaults>
</compile_context>

<pallas_src>
import functools
import math

import jax
import jax.numpy as jnp
from jax.experimental import pallas as pl
from jax.experimental.pallas import tpu as pltpu


def _round_up(a: int, b: int) -> int:
    return (a + b - 1) // b * b


_SUBLANE_MULT = {4: 8, 2: 16, 1: 32}


def _padded_vmem_bytes(shape, dtype) -> int:
    """VMEM footprint of one buffer with (sublane, lane) padding applied."""
    itemsize = jnp.dtype(dtype).itemsize
    sub = _SUBLANE_MULT.get(itemsize, 8)
    if len(shape) == 0:
        shape = (1, 1)
    elif len(shape) == 1:
        shape = (1, shape[0])
    lead = math.prod(shape[:-2]) if len(shape) > 2 else 1
    return lead * _round_up(shape[-2], sub) * _round_up(shape[-1], 128) * itemsize


def _vmem_capacity_bytes() -> int:
    try:
        return int(pltpu.get_tpu_info().vmem_capacity_bytes)
    except Exception:
        return 64 * 1024 * 1024  # conservative default (v7x per-TensorCore VMEM)


# ----------------------------------------------------------------------------
# Path A: tables resident in VMEM, gather via one-hot MXU matmul.
# ----------------------------------------------------------------------------
def _sgns_resident_kernel(x_ref, t_ref, hidden_ref, target_ref, out_ref):
    # x_ref / t_ref   : VMEM (block_b, 1) int32 index blocks for this tile
    # hidden_ref/...  : VMEM (V_pad, E) whole embedding tables (resident)
    # out_ref         : VMEM (1, block_b) f32 lane-dense logits for this tile
    block_b = x_ref.shape[0]
    v_pad = hidden_ref.shape[0]
    tbl_dtype = hidden_ref.dtype

    # One-hot row-select matrices built on the VPU from a lane-direction iota.
    iota_v = jax.lax.broadcasted_iota(jnp.int32, (block_b, v_pad), 1)
    onehot_x = (iota_v == x_ref[...]).astype(tbl_dtype)   # (block_b, V_pad)
    onehot_t = (iota_v == t_ref[...]).astype(tbl_dtype)

    # Row gather as MXU matmuls: one matmul per table per tile.
    center = jnp.dot(onehot_x, hidden_ref[...],
                     preferred_element_type=jnp.float32)  # (block_b, E)
    target = jnp.dot(onehot_t, target_ref[...],
                     preferred_element_type=jnp.float32)

    # Row-wise dot product: VPU multiply + XLU lane reduce, one dense store.
    dots = jnp.sum(center * target, axis=-1)              # (block_b,)
    out_ref[...] = dots[None, :].astype(out_ref.dtype)


# ----------------------------------------------------------------------------
# Path B: tables left in HBM, per-tile DMA row gather into VMEM scratch.
# ----------------------------------------------------------------------------
def _sgns_hbm_gather_kernel(x_idx_ref, t_idx_ref, hidden_hbm, target_hbm,
                            out_ref, center_scr, target_scr, copy_sem,
                            *, block_b: int):
    # x_idx_ref / t_idx_ref : SMEM (B_pad,) int32 scalar-prefetched indices
    # hidden_hbm/target_hbm : (V, E) refs left in HBM (memory_space=pl.ANY)
    # center_scr/target_scr : VMEM (block_b, E) gather destinations
    # copy_sem              : shared DMA semaphore
    base = pl.program_id(0) * block_b

    def issue(j, carry):
        xi = x_idx_ref[base + j]
        ti = t_idx_ref[base + j]
        pltpu.make_async_copy(hidden_hbm.at[pl.ds(xi, 1), :],
                              center_scr.at[pl.ds(j, 1), :], copy_sem).start()
        pltpu.make_async_copy(target_hbm.at[pl.ds(ti, 1), :],
                              target_scr.at[pl.ds(j, 1), :], copy_sem).start()
        return carry

    jax.lax.fori_loop(0, block_b, issue, 0, unroll=8)

    def drain(j, carry):
        # Same-shaped copy descriptors purely to wait on the shared semaphore.
        pltpu.make_async_copy(hidden_hbm.at[pl.ds(0, 1), :],
                              center_scr.at[pl.ds(0, 1), :], copy_sem).wait()
        pltpu.make_async_copy(target_hbm.at[pl.ds(0, 1), :],
                              target_scr.at[pl.ds(0, 1), :], copy_sem).wait()
        return carry

    jax.lax.fori_loop(0, block_b, drain, 0, unroll=8)

    c = center_scr[...].astype(jnp.float32)
    g = target_scr[...].astype(jnp.float32)
    out_ref[...] = jnp.sum(c * g, axis=-1)[None, :]


# ----------------------------------------------------------------------------
# Wrapper
# ----------------------------------------------------------------------------
def sgns_forward(x, t, hidden_w, target_w, *, block_b=None, path="auto"):
    """x, t: (B,) int indices; hidden_w, target_w: (V, E) float tables -> (B,) f32."""
    B = int(x.shape[0])
    V, E = map(int, hidden_w.shape)
    assert tuple(target_w.shape) == (V, E)
    tbl_dtype = hidden_w.dtype
    itemsize = jnp.dtype(tbl_dtype).itemsize

    # Tile size: lane-dense multiples of 128; >= 2 tiles when B allows so the
    # "parallel" grid axis can be sharded across both v7x TensorCores.
    if block_b is None:
        b128 = _round_up(max(B, 1), 128)
        block_b = 128 if b128 <= 128 else min(512, _round_up(b128 // 2, 128))
    B_pad = _round_up(max(B, 1), block_b)
    num_tiles = B_pad // block_b

    # Clamp indices (no runtime bounds check on TPU refs), pad batch with row 0.
    x_i = jnp.clip(x.astype(jnp.int32), 0, V - 1)
    t_i = jnp.clip(t.astype(jnp.int32), 0, V - 1)
    x_pad = jnp.zeros((B_pad,), jnp.int32).at[:B].set(x_i)
    t_pad = jnp.zeros((B_pad,), jnp.int32).at[:B].set(t_i)

    # Generation-aware VMEM budget using padded shapes.
    vmem_cap = _vmem_capacity_bytes()
    usable = min(vmem_cap - (8 << 20), int(vmem_cap * 0.9))

    V_res = _round_up(V, 128)  # pad vocab so the one-hot matmul K dim is aligned
    resident_bytes = (
        2 * _padded_vmem_bytes((V_res, E), tbl_dtype)            # both tables
        + 2 * 2 * _padded_vmem_bytes((block_b, 1), jnp.int32)    # dbl-buffered idx
        + 2 * _padded_vmem_bytes((1, block_b), jnp.float32)      # dbl-buffered out
        + 2 * _padded_vmem_bytes((block_b, V_res), jnp.float32)  # one-hot temps
        + 3 * _padded_vmem_bytes((block_b, E), jnp.float32)      # gathered + prod
        + (2 << 20))                                             # headroom
    hbm_bytes = (
        2 * _padded_vmem_bytes((block_b, E), tbl_dtype)
        + 2 * _padded_vmem_bytes((1, block_b), jnp.float32)
        + (2 << 20))

    if path == "auto":
        path = "resident" if resident_bytes <= usable else "hbm"

    if path == "resident":
        hidden_p, target_p = hidden_w, target_w
        if V_res != V:
            hidden_p = jnp.zeros((V_res, E), tbl_dtype).at[:V].set(hidden_w)
            target_p = jnp.zeros((V_res, E), tbl_dtype).at[:V].set(target_w)
        x2 = x_pad.reshape(B_pad, 1)
        t2 = t_pad.reshape(B_pad, 1)
        cost = pl.CostEstimate(
            flops=2 * 2 * B_pad * V_res * E + 2 * B_pad * E,
            transcendentals=0,
            bytes_accessed=int(2 * V_res * E * itemsize + 2 * B_pad * 4 + B_pad * 4))
        out = pl.pallas_call(
            _sgns_resident_kernel,
            out_shape=jax.ShapeDtypeStruct((1, B_pad), jnp.float32),
            grid=(num_tiles,),
            in_specs=[
                pl.BlockSpec((block_b, 1), lambda i: (i, 0)),
                pl.BlockSpec((block_b, 1), lambda i: (i, 0)),
                pl.BlockSpec(memory_space=pltpu.MemorySpace.VMEM),
                pl.BlockSpec(memory_space=pltpu.MemorySpace.VMEM),
            ],
            out_specs=pl.BlockSpec((1, block_b), lambda i: (0, i)),
            compiler_params=pltpu.CompilerParams(
                dimension_semantics=("parallel",),
                vmem_limit_bytes=int(min(usable, max(resident_bytes, 32 << 20))),
            ),
            cost_estimate=cost,
        )(x2, t2, hidden_p, target_p)
    else:
        # TODO(synk): prefetch tile i+1's rows into a second scratch buffer while
        # computing tile i, and pass indices as per-tile SMEM blocks (instead of
        # full-array scalar prefetch) for very large B; pack bf16 rows as u32
        # pairs for the row DMAs.
        cost = pl.CostEstimate(
            flops=2 * B_pad * E,
            transcendentals=0,
            bytes_accessed=int(2 * B_pad * E * itemsize + 2 * B_pad * 4 + B_pad * 4))
        out = pl.pallas_call(
            functools.partial(_sgns_hbm_gather_kernel, block_b=block_b),
            out_shape=jax.ShapeDtypeStruct((1, B_pad), jnp.float32),
            grid_spec=pltpu.PrefetchScalarGridSpec(
                num_scalar_prefetch=2,
                grid=(num_tiles,),
                in_specs=[
                    pl.BlockSpec(memory_space=pl.ANY),
                    pl.BlockSpec(memory_space=pl.ANY),
                ],
                out_specs=pl.BlockSpec((1, block_b), lambda i, xr, tr: (0, i)),
                scratch_shapes=[
                    pltpu.VMEM((block_b, E), tbl_dtype),
                    pltpu.VMEM((block_b, E), tbl_dtype),
                    pltpu.SemaphoreType.DMA,
                ],
            ),
            compiler_params=pltpu.CompilerParams(
                dimension_semantics=("arbitrary",),
                vmem_limit_bytes=int(min(usable, max(hbm_bytes, 32 << 20))),
            ),
            cost_estimate=cost,
        )(x_pad, t_pad, hidden_w, target_w)

    # equivalent of .squeeze().reshape([-1]) (drop batch padding)
    return out.reshape(-1)[:B]


if __name__ == "__main__":
    vocab_size = 50
    embedding_size = 32
    batch = 8

    key = jax.random.PRNGKey(0)
    k_h, k_t, k_x, k_tt = jax.random.split(key, 4)

    # Deterministic init mirroring torch uniform_(-default_w, default_w)
    default_w = 0.5 / embedding_size
    hidden_w = jax.random.uniform(
        k_h, (vocab_size, embedding_size), jnp.float32, -default_w, default_w)
    target_w = jax.random.uniform(
        k_t, (vocab_size, embedding_size), jnp.float32, -default_w, default_w)

    x = jax.random.randint(k_x, (batch,), 0, vocab_size, dtype=jnp.int32)
    t = jax.random.randint(k_tt, (batch,), 0, vocab_size, dtype=jnp.int32)

    ref = jnp.sum(hidden_w[x] * target_w[t], axis=-1)

    # Auto path (tables fit VMEM here -> resident one-hot MXU gather).
    logit = jax.block_until_ready(sgns_forward(x, t, hidden_w, target_w))
    assert logit.shape == (batch,)
    # MXU f32 matmul may internally run bf16 passes; the one-hot is exact, so the
    # only possible error is table-entry input rounding (<~3e-5 abs at this scale).
    assert jnp.allclose(logit, ref, atol=1e-4, rtol=1e-2), (logit, ref)

    # Also exercise the HBM row-gather fallback path (exact data movement).
    logit_hbm = jax.block_until_ready(
        sgns_forward(x, t, hidden_w, target_w, path="hbm"))
    assert logit_hbm.shape == (batch,)
    assert jnp.allclose(logit_hbm, ref, atol=1e-6, rtol=1e-6), (logit_hbm, ref)

    print("KERNEL_OK")
</pallas_src>

<mosaic_0001>
module attributes {stable_mosaic.version = 11 : i64} {
  func.func @_sgns_resident_kernel(%arg0: i32, %arg1: memref<128x1xi32, #tpu.memory_space<vmem>>, %arg2: memref<128x1xi32, #tpu.memory_space<vmem>>, %arg3: memref<128x32xf32, #tpu.memory_space<vmem>>, %arg4: memref<128x32xf32, #tpu.memory_space<vmem>>, %arg5: memref<1x128xf32, #tpu.memory_space<vmem>>) attributes {dimension_semantics = [#tpu.dimension_semantics<parallel>], iteration_bounds = array<i64: 1>, scalar_prefetch = 0 : i64, scratch_operands = 0 : i64, tpu.core_type = #tpu.core_type<tc>, window_params = [{transform_indices = @transform_0, window_bounds = array<i64: 128, 1>}, {transform_indices = @transform_1, window_bounds = array<i64: 128, 1>}, {pipeline_mode = #tpu.pipeline_mode<synchronous>, transform_indices = @transform_2, window_bounds = array<i64: 128, 32>}, {pipeline_mode = #tpu.pipeline_mode<synchronous>, transform_indices = @transform_3, window_bounds = array<i64: 128, 32>}, {transform_indices = @transform_4, window_bounds = array<i64: 1, 128>}]} {
    %0 = tpu.iota {dimensions = array<i32: 1>} : vector<128x128xi32>
    %c0 = arith.constant 0 : index
    %c0_0 = arith.constant 0 : index
    %1 = vector.load %arg1[%c0, %c0_0] : memref<128x1xi32, #tpu.memory_space<vmem>>, vector<128x1xi32>
    %2 = vector.broadcast %1 : vector<128x1xi32> to vector<128x128xi32>
    %3 = arith.cmpi eq, %0, %2 : vector<128x128xi32>
    %4 = arith.extui %3 : vector<128x128xi1> to vector<128x128xi32>
    %5 = arith.sitofp %4 : vector<128x128xi32> to vector<128x128xf32>
    %c0_1 = arith.constant 0 : index
    %c0_2 = arith.constant 0 : index
    %6 = vector.load %arg2[%c0_1, %c0_2] : memref<128x1xi32, #tpu.memory_space<vmem>>, vector<128x1xi32>
    %7 = vector.broadcast %6 : vector<128x1xi32> to vector<128x128xi32>
    %8 = arith.cmpi eq, %0, %7 : vector<128x128xi32>
    %9 = arith.extui %8 : vector<128x128xi1> to vector<128x128xi32>
    %10 = arith.sitofp %9 : vector<128x128xi32> to vector<128x128xf32>
    %c0_3 = arith.constant 0 : index
    %c0_4 = arith.constant 0 : index
    %11 = vector.load %arg3[%c0_3, %c0_4] : memref<128x32xf32, #tpu.memory_space<vmem>>, vector<128x32xf32>
    %cst = arith.constant dense<0.000000e+00> : vector<128x32xf32>
    %12 = tpu.matmul %5, %11, %cst {dimension_numbers = #tpu.dot_dimension_numbers<[1], [0], [0], [1], [0, 0, 1, 1], [], []>} : vector<128x128xf32>, vector<128x32xf32>, vector<128x32xf32> -> vector<128x32xf32>
    %c0_5 = arith.constant 0 : index
    %c0_6 = arith.constant 0 : index
    %13 = vector.load %arg4[%c0_5, %c0_6] : memref<128x32xf32, #tpu.memory_space<vmem>>, vector<128x32xf32>
    %cst_7 = arith.constant dense<0.000000e+00> : vector<128x32xf32>
    %14 = tpu.matmul %10, %13, %cst_7 {dimension_numbers = #tpu.dot_dimension_numbers<[1], [0], [0], [1], [0, 0, 1, 1], [], []>} : vector<128x128xf32>, vector<128x32xf32>, vector<128x32xf32> -> vector<128x32xf32>
    %15 = arith.mulf %12, %14 : vector<128x32xf32>
    %cst_8 = arith.constant dense<0.000000e+00> : vector<128xf32>
    %16 = vector.multi_reduction <add>, %15, %cst_8 [1] : vector<128x32xf32> to vector<128xf32>
    %17 = vector.shape_cast %16 : vector<128xf32> to vector<1x128xf32>
    %c0_9 = arith.constant 0 : index
    %c0_10 = arith.constant 0 : index
    %18 = vector.load %arg5[%c0_9, %c0_10] : memref<1x128xf32, #tpu.memory_space<vmem>>, vector<1x128xf32>
    tpu.vector_store %arg5[%c0_9, %c0_10], %17 {strides = array<i32>} : memref<1x128xf32, #tpu.memory_space<vmem>>, vector<1x128xf32>,
    return
  }
  func.func @transform_0(%arg0: i32) -> (i32, i32) {
    %c0_i32 = arith.constant 0 : i32
    %c0_i32_0 = arith.constant 0 : i32
    return %arg0, %c0_i32 : i32, i32
  }
  func.func @transform_1(%arg0: i32) -> (i32, i32) {
    %c0_i32 = arith.constant 0 : i32
    %c0_i32_0 = arith.constant 0 : i32
    return %arg0, %c0_i32 : i32, i32
  }
  func.func @transform_2(%arg0: i32) -> (i32, i32) {
    %c0_i32 = arith.constant 0 : i32
    %c0_i32_0 = arith.constant 0 : i32
    %c0_i32_1 = arith.constant 0 : i32
    return %c0_i32, %c0_i32_0 : i32, i32
  }
  func.func @transform_3(%arg0: i32) -> (i32, i32) {
    %c0_i32 = arith.constant 0 : i32
    %c0_i32_0 = arith.constant 0 : i32
    %c0_i32_1 = arith.constant 0 : i32
    return %c0_i32, %c0_i32_0 : i32, i32
  }
  func.func @transform_4(%arg0: i32) -> (i32, i32) {
    %c0_i32 = arith.constant 0 : i32
    %c0_i32_0 = arith.constant 0 : i32
    return %c0_i32, %arg0 : i32, i32
  }
}

</mosaic_0001>

<bundles_post_ra>
// kernel: tpu_custom_call.1
= control target key start
LH: loop header
LB: loop body
LE: loop exit
PB: predicated region body
PF: predicated region fallthrough
CT: control target
= control target key end

     0   :  { %v1039_v2 = vmov 0   ;;  %s1380_s0 = inlined_call_operand.vmem [shape: s32[128,1], index: 0, kind: input, shape index: {}]   ;;  %s1381_s1 = inlined_call_operand.vmem [shape: s32[128,1], index: 1, kind: input, shape index: {}]   ;;  %s1382_s2 = inlined_call_operand.vmem [shape: f32[128,32], index: 2, kind: input, shape index: {}]   ;;  %s1383_s3 = inlined_call_operand.vmem [shape: f32[128,32], index: 3, kind: input, shape index: {}]   ;;  %s1384_s4 = inlined_call_operand.hbm [shape: f32[1,128], index: 4, kind: output, shape index: {}]  }
   0x1   :  { %v21_v0 = vld [vmem:[%s1380_s0 + $0x8] sm:$0xff]  ;;  %v20_v1 = vld [vmem:[%s1380_s0] sm:$0xff]  ;;  %1016 = vset.pattern.permute.xlu1 %v1039_v2  ;;  %1015 = vset.pattern.permute.xlu0 %v1039_v2  ;;  %v134_v5 = vld [vmem:[%s1381_s1 + $0x10] sm:$0xff] }
   0x2   :  { %40 = vperm.xlu1 %1016, %v21_v0   ;;  %37 = vperm.xlu0 %1015, %v20_v1   ;;  %v133_v3 = vld [vmem:[%s1381_s1 + $0x8] sm:$0xff]  ;;  %v132_v4 = vld [vmem:[%s1381_s1] sm:$0xff]  ;;  %v22_v6 = vld [vmem:[%s1380_s0 + $0x10] sm:$0xff] }
   0x3   :  { %v135_v7 = vld [vmem:[%s1381_s1 + $0x18] sm:$0xff]  ;;  %v258_v10 = vld [vmem:[%s1382_s2 + $0x70] sm:$0xff]  ;;  %v257_v13 = vld [vmem:[%s1382_s2 + $0x68] sm:$0xff] }
   0x4   :  { %v259_v8 = vld [vmem:[%s1382_s2 + $0x78] sm:$0xff]  ;;  %v419_v12 = vld [vmem:[%s1383_s3 + $0x70] sm:$0xff]  ;;  %v418_v14 = vld [vmem:[%s1383_s3 + $0x68] sm:$0xff] }
   0x5   :  { %v23_v9 = vld [vmem:[%s1380_s0 + $0x18] sm:$0xff]  ;;  %900 = vmatprep.subr.mxu0 %v259_v8  ;;  %v136_v15 = vld [vmem:[%s1381_s1 + $0x20] sm:$0xff]  ;;  %v137_v20 = vld [vmem:[%s1381_s1 + $0x28] sm:$0xff] }
   0x6   :  { %152 = vperm.xlu1 %1016, %v133_v3   ;;  %149 = vperm.xlu0 %1015, %v132_v4   ;;  %v420_v11 = vld [vmem:[%s1383_s3 + $0x78] sm:$0xff]  ;;  %v24_v16 = vld [vmem:[%s1380_s0 + $0x20] sm:$0xff]  ;;  %v25_v21 = vld [vmem:[%s1380_s0 + $0x28] sm:$0xff] }
   0x7   :  { %901 = vmatpush3.msra.mxu0 %v259_v8  ;;  %956 = vmatprep.subr.mxu1 %v420_v11  ;;  %v256_v17 = vld [vmem:[%s1382_s2 + $0x60] sm:$0xff]  ;;  %v255_v19 = vld [vmem:[%s1382_s2 + $0x58] sm:$0xff]  ;;  %v254_v23 = vld [vmem:[%s1382_s2 + $0x50] sm:$0xff] }
   0x8   :  { %902 = vmatprep.subr.mxu0 %v258_v10  ;;  %957 = vmatpush3.msra.mxu1 %v420_v11  ;;  %v417_v18 = vld [vmem:[%s1383_s3 + $0x60] sm:$0xff]  ;;  %v416_v22 = vld [vmem:[%s1383_s3 + $0x58] sm:$0xff] }
   0x9   :  { %903 = vmatpush3.msra.mxu0 %v258_v10  ;;  %958 = vmatprep.subr.mxu1 %v419_v12 }
   0xa   :  { %155 = vperm.xlu1 %1016, %v134_v5   ;;  %43 = vperm.xlu0 %1015, %v22_v6  }
   0xb   :  { %904 = vmatprep.subr.mxu0 %v257_v13  ;;  %959 = vmatpush3.msra.mxu1 %v419_v12 }
   0xc   :  { %905 = vmatpush3.msra.mxu0 %v257_v13  ;;  %960 = vmatprep.subr.mxu1 %v418_v14 }
   0xd   :  { %906 = vmatprep.subr.mxu0 %v256_v17  ;;  %961 = vmatpush3.msra.mxu1 %v418_v14 }
   0xe   :  { %158 = vperm.xlu1 %1016, %v135_v7   ;;  %46 = vperm.xlu0 %1015, %v23_v9  }
   0xf   :  { %907 = vmatpush3.msra.mxu0 %v256_v17  ;;  %962 = vmatprep.subr.mxu1 %v417_v18 }
  0x10   :  { %908 = vmatprep.subr.mxu0 %v255_v19  ;;  %963 = vmatpush3.msra.mxu1 %v417_v18 }
  0x12   :  { %161 = vperm.xlu1 %1016, %v136_v15   ;;  %49 = vperm.xlu0 %1015, %v24_v16  }
  0x13   :  { %9 = vsyncpa [#allocation3], 0  ;;  %v415_v24 = vld [vmem:[%s1383_s3 + $0x50] sm:$0xff]  ;;  %909 = vmatpush3.msra.mxu0 %v255_v19  ;;  %964 = vmatprep.subr.mxu1 %v416_v22  ;;  %v253_v27 = vld [vmem:[%s1382_s2 + $0x48] sm:$0xff]  ;;  %v18_v1 = vlaneseq  ;;  %v1040_v5 = vmov 1.0  }
  0x14   :  { %v138_v25 = vld [vmem:[%s1381_s1 + $0x30] sm:$0xff]  ;;  %910 = vmatprep.subr.mxu0 %v254_v23  ;;  %965 = vmatpush3.msra.mxu1 %v416_v22  ;;  %v414_v28 = vld [vmem:[%s1383_s3 + $0x48] sm:$0xff]  ;;  %v252_v29 = vld [vmem:[%s1382_s2 + $0x40] sm:$0xff] }
  0x15   :  { %v26_v26 = vld [vmem:[%s1380_s0 + $0x30] sm:$0xff]  ;;  %911 = vmatpush3.msra.mxu0 %v254_v23  ;;  %966 = vmatprep.subr.mxu1 %v415_v24  ;;  %v139_v30 = vld [vmem:[%s1381_s1 + $0x38] sm:$0xff]  ;;  %v413_v32 = vld [vmem:[%s1383_s3 + $0x40] sm:$0xff]  ;;  %v1260_v2 = vand.u32 127, %v18_v1 }
  0x16   :  { %164 = vperm.xlu1 %1016, %v137_v20   ;;  %52 = vperm.xlu0 %1015, %v25_v21   ;;  %v27_v31 = vld [vmem:[%s1380_s0 + $0x38] sm:$0xff]  ;;  %v140_v35 = vld [vmem:[%s1381_s1 + $0x40] sm:$0xff]  ;;  %v250_v37 = vld [vmem:[%s1382_s2 + $0x30] sm:$0xff] }
  0x17   :  { %912 = vmatprep.subr.mxu0 %v253_v27  ;;  %967 = vmatpush3.msra.mxu1 %v415_v24  ;;  %v251_v33 = vld [vmem:[%s1382_s2 + $0x38] sm:$0xff]  ;;  %v28_v36 = vld [vmem:[%s1380_s0 + $0x40] sm:$0xff]  ;;  %v411_v38 = vld [vmem:[%s1383_s3 + $0x30] sm:$0xff] }
  0x18   :  { %913 = vmatpush3.msra.mxu0 %v253_v27  ;;  %968 = vmatprep.subr.mxu1 %v414_v28  ;;  %v412_v34 = vld [vmem:[%s1383_s3 + $0x38] sm:$0xff]  ;;  %v249_v39 = vld [vmem:[%s1382_s2 + $0x28] sm:$0xff]  ;;  %v248_v43 = vld [vmem:[%s1382_s2 + $0x20] sm:$0xff] }
  0x19   :  { %914 = vmatprep.subr.mxu0 %v252_v29  ;;  %969 = vmatpush3.msra.mxu1 %v414_v28  ;;  %v141_v40 = vld [vmem:[%s1381_s1 + $0x48] sm:$0xff]  ;;  %v409_v44 = vld [vmem:[%s1383_s3 + $0x20] sm:$0xff]  ;;  %v142_v45 = vld [vmem:[%s1381_s1 + $0x50] sm:$0xff] }
  0x1a   :  { %167 = vperm.xlu1 %1016, %v138_v25   ;;  %55 = vperm.xlu0 %1015, %v26_v26   ;;  %v29_v41 = vld [vmem:[%s1380_s0 + $0x48] sm:$0xff]  ;;  %v30_v46 = vld [vmem:[%s1380_s0 + $0x50] sm:$0xff]  ;;  %v247_v47 = vld [vmem:[%s1382_s2 + $0x18] sm:$0xff] }
  0x1b   :  { %915 = vmatpush3.msra.mxu0 %v252_v29  ;;  %970 = vmatprep.subr.mxu1 %v413_v32  ;;  %v410_v42 = vld [vmem:[%s1383_s3 + $0x28] sm:$0xff]  ;;  %v408_v48 = vld [vmem:[%s1383_s3 + $0x18] sm:$0xff]  ;;  %v246_v49 = vld [vmem:[%s1382_s2 + $0x10] sm:$0xff] }
  0x1c   :  { %916 = vmatprep.subr.mxu0 %v251_v33  ;;  %971 = vmatpush3.msra.mxu1 %v413_v32  ;;  %v143_v50 = vld [vmem:[%s1381_s1 + $0x58] sm:$0xff]  ;;  %v407_v52 = vld [vmem:[%s1383_s3 + $0x10] sm:$0xff]  ;;  %v245_v53 = vld [vmem:[%s1382_s2 + $0x8] sm:$0xff] }
  0x1d   :  { %917 = vmatpush3.msra.mxu0 %v251_v33  ;;  %972 = vmatprep.subr.mxu1 %v412_v34  ;;  %v31_v51 = vld [vmem:[%s1380_s0 + $0x58] sm:$0xff]  ;;  %v406_v54 = vld [vmem:[%s1383_s3 + $0x8] sm:$0xff]  ;;  %v144_v55 = vld [vmem:[%s1381_s1 + $0x60] sm:$0xff] }
  0x1e   :  { %170 = vperm.xlu1 %1016, %v139_v30   ;;  %58 = vperm.xlu0 %1015, %v27_v31   ;;  %v32_v56 = vld [vmem:[%s1380_s0 + $0x60] sm:$0xff]  ;;  %v145_v59 = vld [vmem:[%s1381_s1 + $0x68] sm:$0xff]  ;;  %v146_v61 = vld [vmem:[%s1381_s1 + $0x70] sm:$0xff] }
  0x1f   :  { %918 = vmatprep.subr.mxu0 %v250_v37  ;;  %973 = vmatpush3.msra.mxu1 %v412_v34  ;;  %v244_v57 = vld [vmem:[%s1382_s2] sm:$0xff]  ;;  %v33_v60 = vld [vmem:[%s1380_s0 + $0x68] sm:$0xff]  ;;  %v34_v62 = vld [vmem:[%s1380_s0 + $0x70] sm:$0xff] }
  0x20   :  { %919 = vmatpush3.msra.mxu0 %v250_v37  ;;  %974 = vmatprep.subr.mxu1 %v411_v38  ;;  %v405_v58 = vld [vmem:[%s1383_s3] sm:$0xff]  ;;  %v147_v63 = vld [vmem:[%s1381_s1 + $0x78] sm:$0xff] }
  0x21   :  { %920 = vmatprep.subr.mxu0 %v249_v39  ;;  %975 = vmatpush3.msra.mxu1 %v411_v38  ;;  %v35_v0 = vld [vmem:[%s1380_s0 + $0x78] sm:$0xff]  ;;  %s1041_s0 = smov [#allocation2]  }
  0x22   :  { %173 = vperm.xlu1 %1016, %v140_v35   ;;  %61 = vperm.xlu0 %1015, %v28_v36   ;;  %s764_s1 = sshll.u32 %s1041_s0, 4  ;;  %s765_s1 = int_to_ptr.vmem [resolvable:$true] %s764_s1 }
  0x23   :  { %921 = vmatpush3.msra.mxu0 %v249_v39  ;;  %976 = vmatprep.subr.mxu1 %v410_v42  ;;  %s1017_s11 = scalar_lea.vmem %s765_s1, 16  ;;  %s1021_s12 = scalar_lea.vmem %s765_s1, 32 }
  0x24   :  { %922 = vmatprep.subr.mxu0 %v248_v43  ;;  %977 = vmatpush3.msra.mxu1 %v410_v42  ;;  %p1018_p0 = scmp.ne.s32.totalorder %s765_s1, %s1017_s11  ;;  %p1022_p1 = scmp.lt.s32.totalorder %s765_s1, %s765_s1 }
  0x25   :  { %923 = vmatpush3.msra.mxu0 %v248_v43  ;;  %978 = vmatprep.subr.mxu1 %v409_v44  ;;  %p1023_p2 = scmp.lt.s32.totalorder %s1021_s12, %s1017_s11 }
  0x26   :  { %176 = vperm.xlu1 %1016, %v141_v40   ;;  %64 = vperm.xlu0 %1015, %v29_v41  }
  0x27   :  { %924 = vmatprep.subr.mxu0 %v247_v47  ;;  %979 = vmatpush3.msra.mxu1 %v409_v44  ;;  %p1024_p3 = por %p1023_p2, %p1022_p1 }
  0x28   :  { %925 = vmatpush3.msra.mxu0 %v247_v47  ;;  %980 = vmatprep.subr.mxu1 %v408_v48 }
  0x29   :  { %926 = vmatprep.subr.mxu0 %v246_v49  ;;  %981 = vmatpush3.msra.mxu1 %v408_v48  ;;  %p1025_p4 = pnand %p1024_p3, %p1018_p0 }
  0x2a   :  { %179 = vperm.xlu1 %1016, %v142_v45   ;;  %67 = vperm.xlu0 %1015, %v30_v46  }
  0x2b   :  { %927 = vmatpush3.msra.mxu0 %v246_v49  ;;  %982 = vmatprep.subr.mxu1 %v407_v52 }
  0x2c   :  { %928 = vmatprep.subr.mxu0 %v245_v53  ;;  %983 = vmatpush3.msra.mxu1 %v407_v52 }
  0x2d   :  { %929 = vmatpush3.msra.mxu0 %v245_v53  ;;  %984 = vmatprep.subr.mxu1 %v406_v54 }
  0x2e   :  { %182 = vperm.xlu1 %1016, %v143_v50   ;;  %70 = vperm.xlu0 %1015, %v31_v51  }
  0x2f   :  { %930 = vmatprep.subr.mxu0 %v244_v57  ;;  %985 = vmatpush3.msra.mxu1 %v406_v54 }
  0x30   :  { %931 = vmatpush3.msra.mxu0 %v244_v57  ;;  %986 = vmatprep.subr.mxu1 %v405_v58 }
  0x31   :  { %987 = vmatpush3.msra.mxu1 %v405_v58 }
  0x32   :  { %185 = vperm.xlu1 %1016, %v144_v55   ;;  %73 = vperm.xlu0 %1015, %v32_v56  }
  0x36   :  { %188 = vperm.xlu1 %1016, %v145_v59   ;;  %76 = vperm.xlu0 %1015, %v33_v60  }
  0x3a   :  { %191 = vperm.xlu1 %1016, %v146_v61   ;;  %79 = vperm.xlu0 %1015, %v34_v62  }
  0x3e   :  { %194 = vperm.xlu1 %1016, %v147_v63   ;;  %82 = vperm.xlu0 %1015, %v35_v0  }
  0x7d   :  { %v41_v3 = vpop.permute.xlu1 %40  ;;  %v38_v4 = vpop.permute.xlu0 %37 }
  0x7e   :  { %vm85_vm0 = vcmp.eq.s32.totalorder %v1260_v2, %v41_v3  ;;  %vm84_vm1 = vcmp.eq.s32.totalorder %v1260_v2, %v38_v4 }
  0x7f   :  { %932 = vmatprep.mubr.msk.f32.mxu0 %vm84_vm1, %v1040_v5 }
  0x80   :  { %933 = vmatmul.mubr.msk.f32.vlgmr.msra.gmra.mxu0 %vm85_vm0, %v1040_v5 }
  0x81   :  { %v153_v6 = vpop.permute.xlu1 %152  ;;  %v150_v7 = vpop.permute.xlu0 %149 }
  0x82   :  { %vm197_vm2 = vcmp.eq.s32.totalorder %v1260_v2, %v153_v6  ;;  %vm196_vm3 = vcmp.eq.s32.totalorder %v1260_v2, %v150_v7 }
  0x83   :  { %988 = vmatprep.mubr.msk.f32.mxu1 %vm196_vm3, %v1040_v5 }
  0x84   :  { %989 = vmatmul.mubr.msk.f32.vlgmr.msra.gmra.mxu1 %vm197_vm2, %v1040_v5 }
  0x85   :  { %v156_v8 = vpop.permute.xlu1 %155  ;;  %v44_v9 = vpop.permute.xlu0 %43 }
  0x86   :  { %vm198_vm4 = vcmp.eq.s32.totalorder %v1260_v2, %v156_v8  ;;  %vm86_vm5 = vcmp.eq.s32.totalorder %v1260_v2, %v44_v9 }
  0x87   :  { %935 = vmatprep.mubr.msk.f32.mxu0 %vm86_vm5, %v1040_v5  ;;  %991 = vmatprep.mubr.msk.f32.mxu1 %vm198_vm4, %v1040_v5 }
  0x89   :  { %v159_v10 = vpop.permute.xlu1 %158  ;;  %v47_v11 = vpop.permute.xlu0 %46 }
  0x8a   :  { %vm199_vm6 = vcmp.eq.s32.totalorder %v1260_v2, %v159_v10  ;;  %vm87_vm7 = vcmp.eq.s32.totalorder %v1260_v2, %v47_v11 }
  0x8b   :  { %936 = vmatmul.mubr.msk.f32.gmra.mxu0 %vm87_vm7, %v1040_v5  ;;  %992 = vmatmul.mubr.msk.f32.gmra.mxu1 %vm199_vm6, %v1040_v5 }
  0x8d   :  { %v162_v12 = vpop.permute.xlu1 %161  ;;  %v50_v13 = vpop.permute.xlu0 %49 }
  0x8e   :  { %vm200_vm8 = vcmp.eq.s32.totalorder %v1260_v2, %v162_v12  ;;  %vm88_vm9 = vcmp.eq.s32.totalorder %v1260_v2, %v50_v13 }
  0x8f   :  { %938 = vmatprep.mubr.msk.f32.mxu0 %vm88_vm9, %v1040_v5  ;;  %994 = vmatprep.mubr.msk.f32.mxu1 %vm200_vm8, %v1040_v5 }
  0x91   :  { %v165_v14 = vpop.permute.xlu1 %164  ;;  %v53_v15 = vpop.permute.xlu0 %52 }
  0x92   :  { %vm201_vm10 = vcmp.eq.s32.totalorder %v1260_v2, %v165_v14  ;;  %vm89_vm11 = vcmp.eq.s32.totalorder %v1260_v2, %v53_v15 }
  0x93   :  { %939 = vmatmul.mubr.msk.f32.gmra.mxu0 %vm89_vm11, %v1040_v5  ;;  %995 = vmatmul.mubr.msk.f32.gmra.mxu1 %vm201_vm10, %v1040_v5 }
  0x95   :  { %v168_v16 = vpop.permute.xlu1 %167  ;;  %v56_v17 = vpop.permute.xlu0 %55 }
  0x96   :  { %vm202_vm12 = vcmp.eq.s32.totalorder %v1260_v2, %v168_v16  ;;  %vm90_vm13 = vcmp.eq.s32.totalorder %v1260_v2, %v56_v17 }
  0x97   :  { %941 = vmatprep.mubr.msk.f32.mxu0 %vm90_vm13, %v1040_v5  ;;  %997 = vmatprep.mubr.msk.f32.mxu1 %vm202_vm12, %v1040_v5 }
  0x99   :  { %v171_v18 = vpop.permute.xlu1 %170  ;;  %v59_v19 = vpop.permute.xlu0 %58 }
  0x9a   :  { %vm203_vm14 = vcmp.eq.s32.totalorder %v1260_v2, %v171_v18  ;;  %vm91_vm15 = vcmp.eq.s32.totalorder %v1260_v2, %v59_v19 }
  0x9b   :  { %942 = vmatmul.mubr.msk.f32.gmra.mxu0 %vm91_vm15, %v1040_v5  ;;  %998 = vmatmul.mubr.msk.f32.gmra.mxu1 %vm203_vm14, %v1040_v5 }
  0x9d   :  { %v174_v20 = vpop.permute.xlu1 %173  ;;  %v62_v21 = vpop.permute.xlu0 %61 }
  0x9e   :  { %vm204_vm0 = vcmp.eq.s32.totalorder %v1260_v2, %v174_v20  ;;  %vm92_vm1 = vcmp.eq.s32.totalorder %v1260_v2, %v62_v21 }
  0x9f   :  { %944 = vmatprep.mubr.msk.f32.mxu0 %vm92_vm1, %v1040_v5  ;;  %1000 = vmatprep.mubr.msk.f32.mxu1 %vm204_vm0, %v1040_v5  ;;  %vm582_vm0 = vcmask 261120   ;;  %vm656_vm1 = vcmask 130112  }
  0xa1   :  { %v177_v22 = vpop.permute.xlu1 %176  ;;  %v65_v23 = vpop.permute.xlu0 %64 }
  0xa2   :  { %vm205_vm2 = vcmp.eq.s32.totalorder %v1260_v2, %v177_v22  ;;  %vm93_vm3 = vcmp.eq.s32.totalorder %v1260_v2, %v65_v23 }
  0xa3   :  { %945 = vmatmul.mubr.msk.f32.gmra.mxu0 %vm93_vm3, %v1040_v5  ;;  %1001 = vmatmul.mubr.msk.f32.gmra.mxu1 %vm205_vm2, %v1040_v5  ;;  %vm663_vm2 = vcmask 195712   ;;  %vm670_vm3 = vcmask 261312  }
  0xa5   :  { %v180_v24 = vpop.permute.xlu1 %179  ;;  %v68_v25 = vpop.permute.xlu0 %67 }
  0xa6   :  { %vm206_vm4 = vcmp.eq.s32.totalorder %v1260_v2, %v180_v24  ;;  %vm94_vm5 = vcmp.eq.s32.totalorder %v1260_v2, %v68_v25 }
  0xa7   :  { %947 = vmatprep.mubr.msk.f32.mxu0 %vm94_vm5, %v1040_v5  ;;  %1003 = vmatprep.mubr.msk.f32.mxu1 %vm206_vm4, %v1040_v5  ;;  %vm677_vm4 = vcmask 326912   ;;  %vm684_vm5 = vcmask 392512  }
  0xa9   :  { %v183_v26 = vpop.permute.xlu1 %182  ;;  %v71_v27 = vpop.permute.xlu0 %70 }
  0xaa   :  { %vm207_vm6 = vcmp.eq.s32.totalorder %v1260_v2, %v183_v26  ;;  %vm95_vm7 = vcmp.eq.s32.totalorder %v1260_v2, %v71_v27 }
  0xab   :  { %948 = vmatmul.mubr.msk.f32.gmra.mxu0 %vm95_vm7, %v1040_v5  ;;  %1004 = vmatmul.mubr.msk.f32.gmra.mxu1 %vm207_vm6, %v1040_v5  ;;  %vm691_vm6 = vcmask 458112   ;;  %vm698_vm7 = vcmask 523712  }
  0xad   :  { %v186_v28 = vpop.permute.xlu1 %185  ;;  %v74_v29 = vpop.permute.xlu0 %73 }
  0xae   :  { %vm208_vm8 = vcmp.eq.s32.totalorder %v1260_v2, %v186_v28  ;;  %vm96_vm9 = vcmp.eq.s32.totalorder %v1260_v2, %v74_v29 }
  0xaf   :  { %950 = vmatprep.mubr.msk.f32.mxu0 %vm96_vm9, %v1040_v5  ;;  %1006 = vmatprep.mubr.msk.f32.mxu1 %vm208_vm8, %v1040_v5  ;;  %vm705_vm8 = vcmask 589312   ;;  %vm712_vm9 = vcmask 654912  }
  0xb1   :  { %v189_v30 = vpop.permute.xlu1 %188  ;;  %v77_v31 = vpop.permute.xlu0 %76 }
  0xb2   :  { %vm209_vm10 = vcmp.eq.s32.totalorder %v1260_v2, %v189_v30  ;;  %vm97_vm11 = vcmp.eq.s32.totalorder %v1260_v2, %v77_v31 }
  0xb3   :  { %951 = vmatmul.mubr.msk.f32.gmra.mxu0 %vm97_vm11, %v1040_v5  ;;  %1007 = vmatmul.mubr.msk.f32.gmra.mxu1 %vm209_vm10, %v1040_v5  ;;  %vm719_vm10 = vcmask 720512   ;;  %vm726_vm11 = vcmask 786112  }
  0xb5   :  { %v192_v32 = vpop.permute.xlu1 %191  ;;  %v80_v33 = vpop.permute.xlu0 %79 }
  0xb6   :  { %vm210_vm12 = vcmp.eq.s32.totalorder %v1260_v2, %v192_v32  ;;  %vm98_vm13 = vcmp.eq.s32.totalorder %v1260_v2, %v80_v33 }
  0xb7   :  { %953 = vmatprep.mubr.msk.f32.mxu0 %vm98_vm13, %v1040_v5  ;;  %1009 = vmatprep.mubr.msk.f32.mxu1 %vm210_vm12, %v1040_v5  ;;  %vm733_vm12 = vcmask 851712   ;;  %vm740_vm13 = vcmask 917312  }
  0xb9   :  { %v195_v34 = vpop.permute.xlu1 %194  ;;  %v83_v35 = vpop.permute.xlu0 %82 }
  0xba   :  { %vm211_vm14 = vcmp.eq.s32.totalorder %v1260_v2, %v195_v34  ;;  %vm99_vm15 = vcmp.eq.s32.totalorder %v1260_v2, %v83_v35 }
  0xbb   :  { %954 = vmatmul.mubr.msk.f32.gmra.mxu0 %vm99_vm15, %v1040_v5  ;;  %1010 = vmatmul.mubr.msk.f32.gmra.mxu1 %vm211_vm14, %v1040_v5  ;;  %vm747_vm14 = vcmask 982912   ;;  %vm754_vm15 = vcmask 1048512  }
 0x140   :  { %v934_v36 = vpop.f32.mrf.mxu0 }
 0x142   :  { %v326_v39 = vpop.f32.mrf.mxu0 }
 0x144   :  { %v990_v37 = vpop.f32.mrf.mxu1 }
 0x145   :  { %v567_v38 = vmul.f32 %v990_v37, %v934_v36 }
 0x146   :  { %v487_v40 = vpop.f32.mrf.mxu1 }
 0x147   :  { %v566_v41 = vmul.f32 %v487_v40, %v326_v39  ;;  %v586_v42 = vsel %vm582_vm0, %v567_v38, 0.0  ;;  %v658_v40 = vadd.s32 4294967280, %v1260_v2 }
 0x148   :  { %587 = vadd.xlane.f32.xlu1 %v586_v42  ;;  %v651_v42 = vadd.s32 4294967288, %v1260_v2 }
 0x149   :  { %v583_v43 = vsel %vm582_vm0, %v566_v41, 0.0  ;;  %v1344_v41 = vshrl.u32 %v18_v1, 7 }
 0x14a   :  { %584 = vadd.xlane.f32.xlu0 %v583_v43 }
 0x14b   :  { %v937_v44 = vpop.f32.mrf.mxu0  ;;  %v993_v45 = vpop.f32.mrf.mxu1  ;;  %v649_v43 = vsub.s32 %v1260_v2, %v1344_v41 }
 0x14c   :  { %v569_v46 = vmul.f32 %v993_v45, %v937_v44  ;;  %v661_v44 = vsub.s32 %v658_v40, %v1344_v41  ;;  %v672_v45 = vadd.s32 4294967264, %v1260_v2 }
 0x14d   :  { %v336_v47 = vpop.f32.mrf.mxu0  ;;  %v497_v48 = vpop.f32.mrf.mxu1 }
 0x14e   :  { %v568_v49 = vmul.f32 %v497_v48, %v336_v47  ;;  %v592_v50 = vsel %vm582_vm0, %v569_v46, 0.0  ;;  %v654_v46 = vsub.s32 %v651_v42, %v1344_v41  ;;  %v665_v48 = vadd.s32 4294967272, %v1260_v2 }
 0x14f   :  { %593 = vadd.xlane.f32.xlu0 %v592_v50  ;;  %v675_v1 = vsub.s32 %v672_v45, %v1344_v41 }
 0x150   :  { %v589_v51 = vsel %vm582_vm0, %v568_v49, 0.0 }
 0x153   :  { %v996_v52 = vpop.f32.mrf.mxu1  ;;  %590 = vadd.xlane.f32.xlu0 %v589_v51  ;;  %v940_v53 = vpop.f32.mrf.mxu0 }
 0x154   :  { %v571_v54 = vmul.f32 %v996_v52, %v940_v53  ;;  %v686_v52 = vadd.s32 4294967248, %v1260_v2 }
 0x155   :  { %v346_v55 = vpop.f32.mrf.mxu0  ;;  %v507_v56 = vpop.f32.mrf.mxu1 }
 0x156   :  { %v570_v57 = vmul.f32 %v507_v56, %v346_v55  ;;  %v598_v58 = vsel %vm582_vm0, %v571_v54, 0.0  ;;  %v668_v54 = vsub.s32 %v665_v48, %v1344_v41  ;;  %v679_v55 = vadd.s32 4294967256, %v1260_v2 }
 0x157   :  { %599 = vadd.xlane.f32.xlu0 %v598_v58 }
 0x158   :  { %v595_v59 = vsel %vm582_vm0, %v570_v57, 0.0 }
 0x159   :  { %596 = vadd.xlane.f32.xlu1 %v595_v59 }
 0x15b   :  { %v943_v60 = vpop.f32.mrf.mxu0  ;;  %v999_v61 = vpop.f32.mrf.mxu1 }
 0x15c   :  { %v573_v62 = vmul.f32 %v999_v61, %v943_v60  ;;  %v689_v61 = vsub.s32 %v686_v52, %v1344_v41 }
 0x15d   :  { %v356_v63 = vpop.f32.mrf.mxu0  ;;  %v517_v0 = vpop.f32.mrf.mxu1 }
 0x15e   :  { %v572_v3 = vmul.f32 %v517_v0, %v356_v63  ;;  %v604_v4 = vsel %vm582_vm0, %v573_v62, 0.0  ;;  %v700_v62 = vadd.s32 4294967232, %v1260_v2  ;;  %v682_v0 = vsub.s32 %v679_v55, %v1344_v41 }
 0x15f   :  { %605 = vadd.xlane.f32.xlu0 %v604_v4 }
 0x160   :  { %v601_v5 = vsel %vm582_vm0, %v572_v3, 0.0  ;;  %v693_v3 = vadd.s32 4294967240, %v1260_v2 }
 0x161   :  { %602 = vadd.xlane.f32.xlu1 %v601_v5 }
 0x163   :  { %v946_v6 = vpop.f32.mrf.mxu0  ;;  %v1002_v7 = vpop.f32.mrf.mxu1 }
 0x164   :  { %v575_v8 = vmul.f32 %v1002_v7, %v946_v6 }
 0x165   :  { %v366_v9 = vpop.f32.mrf.mxu0  ;;  %v527_v10 = vpop.f32.mrf.mxu1 }
 0x166   :  { %v574_v11 = vmul.f32 %v527_v10, %v366_v9  ;;  %v610_v12 = vsel %vm582_vm0, %v575_v8, 0.0  ;;  %v703_v9 = vsub.s32 %v700_v62, %v1344_v41  ;;  %v714_v10 = vadd.s32 4294967216, %v1260_v2 }
 0x167   :  { %611 = vadd.xlane.f32.xlu0 %v610_v12  ;;  %v696_v12 = vsub.s32 %v693_v3, %v1344_v41 }
 0x168   :  { %v607_v13 = vsel %vm582_vm0, %v574_v11, 0.0 }
 0x169   :  { %608 = vadd.xlane.f32.xlu1 %v607_v13  ;;  %v707_v13 = vadd.s32 4294967224, %v1260_v2 }
 0x16b   :  { %v949_v14 = vpop.f32.mrf.mxu0  ;;  %v1005_v15 = vpop.f32.mrf.mxu1 }
 0x16c   :  { %v577_v16 = vmul.f32 %v1005_v15, %v949_v14 }
 0x16d   :  { %v376_v17 = vpop.f32.mrf.mxu0  ;;  %v537_v18 = vpop.f32.mrf.mxu1 }
 0x16e   :  { %v576_v19 = vmul.f32 %v537_v18, %v376_v17  ;;  %v616_v20 = vsel %vm582_vm0, %v577_v16, 0.0 }
 0x16f   :  { %617 = vadd.xlane.f32.xlu0 %v616_v20  ;;  %v728_v20 = vadd.s32 4294967200, %v1260_v2 }
 0x170   :  { %v613_v21 = vsel %vm582_vm0, %v576_v19, 0.0  ;;  %v717_v19 = vsub.s32 %v714_v10, %v1344_v41 }
 0x171   :  { %614 = vadd.xlane.f32.xlu1 %v613_v21 }
 0x173   :  { %v952_v22 = vpop.f32.mrf.mxu0  ;;  %v1008_v23 = vpop.f32.mrf.mxu1 }
 0x174   :  { %v579_v24 = vmul.f32 %v1008_v23, %v952_v22  ;;  %v710_v22 = vsub.s32 %v707_v13, %v1344_v41  ;;  %v721_v23 = vadd.s32 4294967208, %v1260_v2 }
 0x175   :  { %v386_v25 = vpop.f32.mrf.mxu0  ;;  %v547_v26 = vpop.f32.mrf.mxu1 }
 0x176   :  { %v578_v27 = vmul.f32 %v547_v26, %v386_v25  ;;  %v622_v28 = vsel %vm582_vm0, %v579_v24, 0.0 }
 0x177   :  { %623 = vadd.xlane.f32.xlu0 %v622_v28 }
 0x178   :  { %v619_v29 = vsel %vm582_vm0, %v578_v27, 0.0 }
 0x179   :  { %620 = vadd.xlane.f32.xlu1 %v619_v29  ;;  %v731_v29 = vsub.s32 %v728_v20, %v1344_v41 }
 0x17b   :  { %v955_v30 = vpop.f32.mrf.mxu0  ;;  %v1011_v31 = vpop.f32.mrf.mxu1 }
 0x17c   :  { %v581_v32 = vmul.f32 %v1011_v31, %v955_v30  ;;  %v724_v31 = vsub.s32 %v721_v23, %v1344_v41 }
 0x17d   :  { %v396_v33 = vpop.f32.mrf.mxu0  ;;  %v557_v34 = vpop.f32.mrf.mxu1 }
 0x17e   :  { %v580_v35 = vmul.f32 %v557_v34, %v396_v33  ;;  %v628_v36 = vsel %vm582_vm0, %v581_v32, 0.0  ;;  %v735_v32 = vadd.s32 4294967192, %v1260_v2  ;;  %v742_v34 = vadd.s32 4294967184, %v1260_v2 }
 0x17f   :  { %629 = vadd.xlane.f32.xlu0 %v628_v36  ;;  %v749_v36 = vadd.s32 4294967176, %v1260_v2 }
 0x180   :  { %v625_v37 = vsel %vm582_vm0, %v580_v35, 0.0  ;;  %v738_v42 = vsub.s32 %v735_v32, %v1344_v41 }
 0x181   :  { %626 = vadd.xlane.f32.xlu1 %v625_v37  ;;  %v752_v45 = vsub.s32 %v749_v36, %v1344_v41 }
 0x1d1   :  { %v588_v47 = vpop.xlane.xlu1 %587 }
 0x1d2   :  { %v655_v53 = vrot.slane %v588_v47, %v654_v46 }
 0x1d3   :  { %v585_v38 = vpop.xlane.xlu0 %584 }
 0x1d4   :  { %v650_v50 = vrot.slane %v585_v38, %v649_v43  ;;  %v745_v43 = vsub.s32 %v742_v34, %v1344_v41 }
 0x1d6   :  { %v657_v57 = vsel %vm656_vm1, %v655_v53, %v650_v50 }
 0x1d8   :  { %v594_v39 = vpop.xlane.xlu0 %593 }
 0x1d9   :  { %v669_v63 = vrot.slane %v594_v39, %v668_v54 }
 0x1dc   :  { %v591_v49 = vpop.xlane.xlu0 %590 }
 0x1dd   :  { %v662_v51 = vrot.slane %v591_v49, %v661_v44 }
 0x1df   :  { %v664_v58 = vsel %vm663_vm2, %v662_v51, %v657_v57 }
 0x1e0   :  { %v600_v59 = vpop.xlane.xlu0 %599  ;;  %v671_v5 = vsel %vm670_vm3, %v669_v63, %v664_v58 }
 0x1e1   :  { %v683_v11 = vrot.slane %v600_v59, %v682_v0 }
 0x1e2   :  { %v597_v56 = vpop.xlane.xlu1 %596 }
 0x1e3   :  { %v676_v60 = vrot.slane %v597_v56, %v675_v1 }
 0x1e5   :  { %v678_v6 = vsel %vm677_vm4, %v676_v60, %v671_v5 }
 0x1e6   :  { %v685_v15 = vsel %vm684_vm5, %v683_v11, %v678_v6 }
 0x1e8   :  { %v606_v7 = vpop.xlane.xlu0 %605 }
 0x1e9   :  { %v697_v21 = vrot.slane %v606_v7, %v696_v12 }
 0x1ea   :  { %v603_v4 = vpop.xlane.xlu1 %602 }
 0x1eb   :  { %v690_v8 = vrot.slane %v603_v4, %v689_v61 }
 0x1ed   :  { %v692_v16 = vsel %vm691_vm6, %v690_v8, %v685_v15 }
 0x1ee   :  { %v699_v25 = vsel %vm698_vm7, %v697_v21, %v692_v16 }
 0x1f0   :  { %v612_v17 = vpop.xlane.xlu0 %611 }
 0x1f1   :  { %v711_v30 = vrot.slane %v612_v17, %v710_v22 }
 0x1f2   :  { %v609_v14 = vpop.xlane.xlu1 %608 }
 0x1f3   :  { %v704_v18 = vrot.slane %v609_v14, %v703_v9 }
 0x1f5   :  { %v706_v26 = vsel %vm705_vm8, %v704_v18, %v699_v25 }
 0x1f6   :  { %v713_v35 = vsel %vm712_vm9, %v711_v30, %v706_v26 }
 0x1f8   :  { %v618_v27 = vpop.xlane.xlu0 %617 }
 0x1f9   :  { %v725_v40 = vrot.slane %v618_v27, %v724_v31 }
 0x1fa   :  { %v615_v24 = vpop.xlane.xlu1 %614 }
 0x1fb   :  { %v718_v28 = vrot.slane %v615_v24, %v717_v19 }
 0x1fd   :  { %v720_v37 = vsel %vm719_vm10, %v718_v28, %v713_v35 }
 0x1fe   :  { %v727_v44 = vsel %vm726_vm11, %v725_v40, %v720_v37 }
 0x200   :  { %v624_v38 = vpop.xlane.xlu0 %623 }
 0x201   :  { %v739_v48 = vrot.slane %v624_v38, %v738_v42 }
 0x202   :  { %v621_v33 = vpop.xlane.xlu1 %620 }
 0x203   :  { %v732_v39 = vrot.slane %v621_v33, %v731_v29 }
 0x205   :  { %v734_v46 = vsel %vm733_vm12, %v732_v39, %v727_v44 }
 0x206   :  { %v741_v51 = vsel %vm740_vm13, %v739_v48, %v734_v46 }
 0x208   :  { %v630_v47 = vpop.xlane.xlu0 %629 }
 0x209   :  { %v753_v50 = vrot.slane %v630_v47, %v752_v45 }
 0x20a   :  { %v627_v49 = vpop.xlane.xlu1 %626 }
 0x20b   :  { %v746_v2 = vrot.slane %v627_v49, %v745_v43 }
 0x20d   :  { %v748_v1 = vsel %vm747_vm14, %v746_v2, %v741_v51 }
 0x20e   :  { %v755_v52 = vsel %vm754_vm15, %v753_v50, %v748_v1 }
 0x20f   :  { %757 = vst [vmem:[#allocation2] sm:$0x1] %v755_v52 }
 0x210   :  { %1028 = shalt.err (!%p1025_p4)
}
 0x211   :  { %767 = dma.vmem_to_hbm [thread:$0]  %s765_s1, 16, %s1384_s4, [#allocation3]  }
 0x212   :  { %1037 = dma.done.wait [#allocation3], 16  }
 0x213   :  { %1038 = vsyncadd [#allocation3], 4294967280 }
 0x214   :  { %771 = vsyncpa [#allocation3], 1 }

</bundles_post_ra>
